<compile_context>
chip_gen: v7x
topology: tpu7x:2x2x1
jax: 0.10.0
libtpu: 0.0.40
codegen_flags: <defaults>
</compile_context>

<pallas_src>
import functools

import jax
import jax.numpy as jnp
from jax.experimental import pallas as pl
from jax.experimental.pallas import tpu as pltpu

PAD_ID = 1  # PyTorch code uses code_inputs.ne(1) as the attention mask


def _cls_head_kernel(s_tile, seq_len,
                     ids_ref, hs_ref, w1_ref, b1_ref, w2t_ref, b2_ref,
                     out_ref, acc_ref, cnt_ref):
    # ids_ref : (B_TILE, S_TILE) int32
    # hs_ref  : (B_TILE, S_TILE, H) f32/bf16  -- encoder.last_hidden_state tile
    # w1_ref  : (H, H//2) f32,  b1_ref: (1, H//2) f32
    # w2t_ref : (1, H//2) f32,  b2_ref: (1, 1) f32
    # out_ref : (B_TILE, 1) f32
    # acc_ref : (B_TILE, H) f32 scratch (sum_embeddings accumulator)
    # cnt_ref : (B_TILE, 1) f32 scratch (valid-token count accumulator)
    s_idx = pl.program_id(1)
    n_seq = pl.num_programs(1)

    @pl.when(s_idx == 0)
    def _init():
        acc_ref[...] = jnp.zeros_like(acc_ref)
        cnt_ref[...] = jnp.zeros_like(cnt_ref)

    ids = ids_ref[...]
    hs = hs_ref[...]            # keep native dtype (bf16 stays bf16)
    valid = ids != PAD_ID       # (B_TILE, S_TILE) bool

    def accumulate(valid_mask, hs_tile):
        # mask is exactly 0/1 -> exact in bf16; f32 accumulation on the MXU:
        #   (B,1,S) x (B,S,H) -> (B,1,H)
        mask = valid_mask.astype(hs_tile.dtype)
        part = jnp.einsum('bqs,bsh->bqh', mask[:, None, :], hs_tile,
                          preferred_element_type=jnp.float32)
        acc_ref[...] += part[:, 0, :]
        cnt_ref[...] += jnp.sum(valid_mask.astype(jnp.float32), axis=1,
                                keepdims=True)

    if seq_len % s_tile == 0:
        # Steady state: no ragged handling at all.
        accumulate(valid, hs)
    else:
        is_last = s_idx == n_seq - 1

        @pl.when(jnp.logical_not(is_last))
        def _steady():
            accumulate(valid, hs)

        @pl.when(is_last)
        def _ragged():
            # Last seq tile extends past S: out-of-bounds data is garbage
            # (could be NaN), so zero it and drop it from the mask/count.
            pos = s_idx * s_tile + jax.lax.broadcasted_iota(
                jnp.int32, ids.shape, 1)
            inb = pos < seq_len
            hs_c = jnp.where(inb[:, :, None], hs, jnp.zeros_like(hs))
            accumulate(valid & inb, hs_c)

    @pl.when(s_idx == n_seq - 1)
    def _finalize():
        # sum_embeddings / clamp(sum_mask, 1e-9)
        pooled = acc_ref[...] / jnp.maximum(cnt_ref[...], 1e-9)  # (B_TILE, H)
        h1 = jnp.dot(pooled, w1_ref[...],
                     preferred_element_type=jnp.float32) + b1_ref[...]
        h1 = jnp.maximum(h1, 0.0)
        # TODO(synk): Dropout(p=0.1) is identity in eval/inference mode.
        # Second Linear has a single output column -> cheaper as a lane reduce.
        logit = jnp.sum(h1 * w2t_ref[...], axis=-1, keepdims=True) + b2_ref[...]
        out_ref[...] = jax.nn.sigmoid(logit)


def _choose_tiles(batch, seq, hidden, itemsize,
                  hs_buffer_budget=8 * 1024 * 1024):
    """Pick (B_TILE, S_TILE): ~8 MiB per hs buffer, full-seq block when it fits."""
    # Batch tile: keep >= 2 batch grid steps when B > 8 so v7x megacore engages;
    # allow larger tiles (fewer, bigger strided DMAs) for big batches.
    if batch <= 8:
        b_tile = batch
    elif batch < 32:
        b_tile = 8
    elif batch < 64:
        b_tile = 16
    else:
        b_tile = 32
    max_s = hs_buffer_budget // max(b_tile * hidden * itemsize, 1)
    if seq <= max(max_s, 128):
        s_tile = seq                              # single full-seq block
    else:
        s_tile = max((max_s // 128) * 128, 128)   # multiple of 128 (lane dim)
    return b_tile, s_tile


def model_classification_forward(code_inputs, last_hidden_state, params):
    """code_inputs: (B, S) int token ids; last_hidden_state: (B, S, H) f32/bf16."""
    code_inputs = code_inputs.astype(jnp.int32)
    B, S = code_inputs.shape
    H = last_hidden_state.shape[-1]
    w1, b1, w2, b2 = params
    h2 = w1.shape[1]
    w2t = w2.reshape(1, h2)  # (H/2,1) -> (1,H/2) so the N=1 linear is a lane reduce

    itemsize = jnp.dtype(last_hidden_state.dtype).itemsize
    b_tile, s_tile = _choose_tiles(B, S, H, itemsize)
    grid = (pl.cdiv(B, b_tile), pl.cdiv(S, s_tile))

    kernel = functools.partial(_cls_head_kernel, s_tile, S)

    flops = 2 * B * S * H + 2 * B * H * h2 + 2 * B * h2
    bytes_accessed = (B * S * H * itemsize + B * S * 4
                      + (H * h2 + 2 * h2 + 1) * 4 + B * 4)

    out = pl.pallas_call(
        kernel,
        out_shape=jax.ShapeDtypeStruct((B, 1), jnp.float32),
        grid_spec=pltpu.PrefetchScalarGridSpec(
            num_scalar_prefetch=0,
            grid=grid,
            in_specs=[
                pl.BlockSpec((b_tile, s_tile), lambda b, s: (b, s)),
                pl.BlockSpec((b_tile, s_tile, H), lambda b, s: (b, s, 0)),
                # Head weights: constant index map -> resident in VMEM across seq steps.
                pl.BlockSpec((H, h2), lambda b, s: (0, 0)),
                pl.BlockSpec((1, h2), lambda b, s: (0, 0)),
                pl.BlockSpec((1, h2), lambda b, s: (0, 0)),
                pl.BlockSpec((1, 1), lambda b, s: (0, 0)),
            ],
            out_specs=pl.BlockSpec((b_tile, 1), lambda b, s: (b, 0)),
            scratch_shapes=[
                pltpu.VMEM((b_tile, H), jnp.float32),
                pltpu.VMEM((b_tile, 1), jnp.float32),
            ],
        ),
        compiler_params=pltpu.CompilerParams(
            dimension_semantics=("parallel", "arbitrary"),
            # 2x hs buffers (~16 MiB) + ids + dbl-buffered head weights (~2.3 MiB)
            # + ragged-tile temporaries stays well under 48 MiB on v5e/v6e/v7x.
            vmem_limit_bytes=48 * 1024 * 1024),
        cost_estimate=pl.CostEstimate(
            flops=flops, transcendentals=B, bytes_accessed=bytes_accessed),
    )(code_inputs, last_hidden_state, w1, b1, w2t, b2)

    # .squeeze() in the PyTorch module
    return jnp.squeeze(out)


def init_params(hidden_size, key):
    h2 = hidden_size // 2
    k1, k2 = jax.random.split(key)
    w1 = jax.random.normal(k1, (hidden_size, h2), jnp.float32) * 0.02
    b1 = jnp.zeros((1, h2), jnp.float32)
    w2 = jax.random.normal(k2, (h2, 1), jnp.float32) * 0.02
    b2 = jnp.zeros((1, 1), jnp.float32)
    return w1, b1, w2, b2


def _reference(code_inputs, hs, params):
    w1, b1, w2, b2 = params
    mask = (code_inputs != PAD_ID).astype(jnp.float32)
    hs32 = hs.astype(jnp.float32)
    pooled = (hs32 * mask[:, :, None]).sum(1) / jnp.maximum(
        mask.sum(1, keepdims=True), 1e-9)
    h1 = jnp.maximum(
        jnp.dot(pooled, w1, precision=jax.lax.Precision.HIGHEST) + b1, 0.0)
    logit = jnp.dot(h1, w2, precision=jax.lax.Precision.HIGHEST) + b2
    return jnp.squeeze(jax.nn.sigmoid(logit))


if __name__ == "__main__":
    key = jax.random.PRNGKey(0)

    # ---- small demo shapes (single grid step) ----
    B, S, H = 2, 8, 32
    k_ids, k_hs, k_p, key = jax.random.split(key, 4)
    code_inputs = jax.random.randint(k_ids, (B, S), 0, 10, dtype=jnp.int32)
    code_inputs = code_inputs.at[:, -2:].set(PAD_ID)  # padded tail
    hs = jax.random.normal(k_hs, (B, S, H), jnp.float32)
    params = init_params(H, k_p)

    out = jax.block_until_ready(model_classification_forward(code_inputs, hs, params))
    ref = _reference(code_inputs, hs, params)
    assert out.shape == ref.shape
    assert jnp.allclose(out, ref, atol=1e-5, rtol=1e-5), (out, ref)

    # ---- codet5-like shapes: full-seq block, bf16 hidden state ----
    B, S, H = 8, 400, 768
    k_ids, k_hs, k_p, key = jax.random.split(key, 4)
    code_inputs = jax.random.randint(k_ids, (B, S), 0, 10, dtype=jnp.int32)
    code_inputs = code_inputs.at[:, -64:].set(PAD_ID)
    hs = jax.random.normal(k_hs, (B, S, H), jnp.float32).astype(jnp.bfloat16)
    params = init_params(H, k_p)

    out = jax.block_until_ready(model_classification_forward(code_inputs, hs, params))
    ref = _reference(code_inputs, hs, params)
    assert out.shape == ref.shape
    assert jnp.allclose(out, ref, atol=5e-3, rtol=5e-3), (out, ref)

    # ---- long-seq / multi-batch-tile shapes: exercises the tiled (batch, seq)
    #      pipeline, bf16 MXU accumulation and the ragged last seq tile ----
    B, S, H = 16, 1300, 768
    k_ids, k_hs, k_p = jax.random.split(key, 3)
    code_inputs = jax.random.randint(k_ids, (B, S), 0, 10, dtype=jnp.int32)
    code_inputs = code_inputs.at[:, -200:].set(PAD_ID)
    hs = jax.random.normal(k_hs, (B, S, H), jnp.float32).astype(jnp.bfloat16)
    params = init_params(H, k_p)

    out = jax.block_until_ready(model_classification_forward(code_inputs, hs, params))
    ref = _reference(code_inputs, hs, params)
    assert out.shape == ref.shape
    assert jnp.allclose(out, ref, atol=5e-3, rtol=5e-3), (out, ref)

    print("KERNEL_OK")
</pallas_src>

<mosaic_0001>
module attributes {stable_mosaic.version = 11 : i64} {
  func.func @_cls_head_kernel(%arg0: i32, %arg1: i32, %arg2: memref<2x8xi32, #tpu.memory_space<vmem>>, %arg3: memref<2x8x32xf32, #tpu.memory_space<vmem>>, %arg4: memref<32x16xf32, #tpu.memory_space<vmem>>, %arg5: memref<1x16xf32, #tpu.memory_space<vmem>>, %arg6: memref<1x16xf32, #tpu.memory_space<vmem>>, %arg7: memref<1x1xf32, #tpu.memory_space<vmem>>, %arg8: memref<2x1xf32, #tpu.memory_space<vmem>>, %arg9: memref<2x32xf32, #tpu.memory_space<vmem>>, %arg10: memref<2x1xf32, #tpu.memory_space<vmem>>) attributes {dimension_semantics = [#tpu.dimension_semantics<parallel>, #tpu.dimension_semantics<arbitrary>], iteration_bounds = array<i64: 1, 1>, scalar_prefetch = 0 : i64, scratch_operands = 2 : i64, tpu.core_type = #tpu.core_type<tc>, window_params = [{transform_indices = @transform_0, window_bounds = array<i64: 2, 8>}, {transform_indices = @transform_1, window_bounds = array<i64: 2, 8, 32>}, {pipeline_mode = #tpu.pipeline_mode<synchronous>, transform_indices = @transform_2, window_bounds = array<i64: 32, 16>}, {pipeline_mode = #tpu.pipeline_mode<synchronous>, transform_indices = @transform_3, window_bounds = array<i64: 1, 16>}, {pipeline_mode = #tpu.pipeline_mode<synchronous>, transform_indices = @transform_4, window_bounds = array<i64: 1, 16>}, {pipeline_mode = #tpu.pipeline_mode<synchronous>, transform_indices = @transform_5, window_bounds = array<i64: 1, 1>}, {transform_indices = @transform_6, window_bounds = array<i64: 2, 1>}]} {
    %c0_i32 = arith.constant 0 : i32
    %0 = arith.cmpi eq, %arg1, %c0_i32 : i32
    %1 = arith.extui %0 : i1 to i32
    %c0_i32_0 = arith.constant 0 : i32
    %2 = arith.cmpi ne, %1, %c0_i32_0 : i32
    scf.if %2 {
      %cst_16 = arith.constant 0.000000e+00 : f32
      %25 = vector.broadcast %cst_16 : f32 to vector<2x32xf32>
      %c0_17 = arith.constant 0 : index
      %c0_18 = arith.constant 0 : index
      %26 = vector.load %arg9[%c0_17, %c0_18] : memref<2x32xf32, #tpu.memory_space<vmem>>, vector<2x32xf32>
      tpu.vector_store %arg9[%c0_17, %c0_18], %25 {strides = array<i32>} : memref<2x32xf32, #tpu.memory_space<vmem>>, vector<2x32xf32>,
      %cst_19 = arith.constant 0.000000e+00 : f32
      %27 = vector.broadcast %cst_19 : f32 to vector<2x1xf32>
      %c0_20 = arith.constant 0 : index
      %c0_21 = arith.constant 0 : index
      %28 = vector.load %arg10[%c0_20, %c0_21] : memref<2x1xf32, #tpu.memory_space<vmem>>, vector<2x1xf32>
      tpu.vector_store %arg10[%c0_20, %c0_21], %27 {strides = array<i32>} : memref<2x1xf32, #tpu.memory_space<vmem>>, vector<2x1xf32>,
    } else {
    }
    %c0 = arith.constant 0 : index
    %c0_1 = arith.constant 0 : index
    %3 = vector.load %arg2[%c0, %c0_1] : memref<2x8xi32, #tpu.memory_space<vmem>>, vector<2x8xi32>
    %c0_2 = arith.constant 0 : index
    %c0_3 = arith.constant 0 : index
    %c0_4 = arith.constant 0 : index
    %4 = vector.load %arg3[%c0_2, %c0_3, %c0_4] : memref<2x8x32xf32, #tpu.memory_space<vmem>>, vector<2x8x32xf32>
    %c1_i32 = arith.constant 1 : i32
    %5 = vector.broadcast %c1_i32 : i32 to vector<2x8xi32>
    %6 = arith.cmpi ne, %3, %5 : vector<2x8xi32>
    %7 = arith.extui %6 : vector<2x8xi1> to vector<2x8xi32>
    %8 = arith.sitofp %7 : vector<2x8xi32> to vector<2x8xf32>
    %9 = vector.shape_cast %8 : vector<2x8xf32> to vector<2x1x8xf32>
    "tpu.trace_start"() <{level = 10 : i32, message = "bqs,bsh->bqh"}> : () -> ()
    %cst = arith.constant dense<0.000000e+00> : vector<2x1x32xf32>
    %10 = tpu.matmul %9, %4, %cst {dimension_numbers = #tpu.dot_dimension_numbers<[2], [1], [1], [2], [0, 0, 0, 1, 1, 2], [0], [0]>} : vector<2x1x8xf32>, vector<2x8x32xf32>, vector<2x1x32xf32> -> vector<2x1x32xf32>
    "tpu.trace_stop"() : () -> ()
    %c0_5 = arith.constant 0 : index
    %c0_6 = arith.constant 0 : index
    %11 = vector.load %arg9[%c0_5, %c0_6] : memref<2x32xf32, #tpu.memory_space<vmem>>, vector<2x32xf32>
    %12 = vector.shape_cast %10 : vector<2x1x32xf32> to vector<2x32xf32>
    %13 = arith.addf %11, %12 : vector<2x32xf32>
    %c0_7 = arith.constant 0 : index
    %c0_8 = arith.constant 0 : index
    %14 = vector.load %arg9[%c0_7, %c0_8] : memref<2x32xf32, #tpu.memory_space<vmem>>, vector<2x32xf32>
    tpu.vector_store %arg9[%c0_7, %c0_8], %13 {strides = array<i32>} : memref<2x32xf32, #tpu.memory_space<vmem>>, vector<2x32xf32>,
    %c0_9 = arith.constant 0 : index
    %c0_10 = arith.constant 0 : index
    %15 = vector.load %arg10[%c0_9, %c0_10] : memref<2x1xf32, #tpu.memory_space<vmem>>, vector<2x1xf32>
    %16 = arith.extui %6 : vector<2x8xi1> to vector<2x8xi32>
    %17 = arith.sitofp %16 : vector<2x8xi32> to vector<2x8xf32>
    %cst_11 = arith.constant dense<0.000000e+00> : vector<2xf32>
    %18 = vector.multi_reduction <add>, %17, %cst_11 [1] : vector<2x8xf32> to vector<2xf32>
    %19 = vector.shape_cast %18 : vector<2xf32> to vector<2x1xf32>
    %20 = arith.addf %15, %19 : vector<2x1xf32>
    %c0_12 = arith.constant 0 : index
    %c0_13 = arith.constant 0 : index
    %21 = vector.load %arg10[%c0_12, %c0_13] : memref<2x1xf32, #tpu.memory_space<vmem>>, vector<2x1xf32>
    tpu.vector_store %arg10[%c0_12, %c0_13], %20 {strides = array<i32>} : memref<2x1xf32, #tpu.memory_space<vmem>>, vector<2x1xf32>,
    %c0_i32_14 = arith.constant 0 : i32
    %22 = arith.cmpi eq, %arg1, %c0_i32_14 : i32
    %23 = arith.extui %22 : i1 to i32
    %c0_i32_15 = arith.constant 0 : i32
    %24 = arith.cmpi ne, %23, %c0_i32_15 : i32
    scf.if %24 {
      %c0_16 = arith.constant 0 : index
      %c0_17 = arith.constant 0 : index
      %25 = vector.load %arg9[%c0_16, %c0_17] : memref<2x32xf32, #tpu.memory_space<vmem>>, vector<2x32xf32>
      %c0_18 = arith.constant 0 : index
      %c0_19 = arith.constant 0 : index
      %26 = vector.load %arg10[%c0_18, %c0_19] : memref<2x1xf32, #tpu.memory_space<vmem>>, vector<2x1xf32>
      %cst_20 = arith.constant 9.99999971E-10 : f32
      %27 = vector.broadcast %cst_20 : f32 to vector<2x1xf32>
      %28 = arith.maximumf %26, %27 : vector<2x1xf32>
      %29 = vector.broadcast %28 : vector<2x1xf32> to vector<2x32xf32>
      %30 = arith.divf %25, %29 : vector<2x32xf32>
      %c0_21 = arith.constant 0 : index
      %c0_22 = arith.constant 0 : index
      %31 = vector.load %arg4[%c0_21, %c0_22] : memref<32x16xf32, #tpu.memory_space<vmem>>, vector<32x16xf32>
      %cst_23 = arith.constant dense<0.000000e+00> : vector<2x16xf32>
      %32 = tpu.matmul %30, %31, %cst_23 {dimension_numbers = #tpu.dot_dimension_numbers<[1], [0], [0], [1], [0, 0, 1, 1], [], []>} : vector<2x32xf32>, vector<32x16xf32>, vector<2x16xf32> -> vector<2x16xf32>
      %c0_24 = arith.constant 0 : index
      %c0_25 = arith.constant 0 : index
      %33 = vector.load %arg5[%c0_24, %c0_25] : memref<1x16xf32, #tpu.memory_space<vmem>>, vector<1x16xf32>
      %34 = vector.broadcast %33 : vector<1x16xf32> to vector<2x16xf32>
      %35 = arith.addf %32, %34 : vector<2x16xf32>
      %cst_26 = arith.constant 0.000000e+00 : f32
      %36 = vector.broadcast %cst_26 : f32 to vector<2x16xf32>
      %37 = arith.maximumf %35, %36 : vector<2x16xf32>
      %c0_27 = arith.constant 0 : index
      %c0_28 = arith.constant 0 : index
      %38 = vector.load %arg6[%c0_27, %c0_28] : memref<1x16xf32, #tpu.memory_space<vmem>>, vector<1x16xf32>
      %39 = vector.broadcast %38 : vector<1x16xf32> to vector<2x16xf32>
      %40 = arith.mulf %37, %39 : vector<2x16xf32>
      %cst_29 = arith.constant dense<0.000000e+00> : vector<2xf32>
      %41 = vector.multi_reduction <add>, %40, %cst_29 [1] : vector<2x16xf32> to vector<2xf32>
      %42 = vector.shape_cast %41 : vector<2xf32> to vector<2x1xf32>
      %c0_30 = arith.constant 0 : index
      %c0_31 = arith.constant 0 : index
      %43 = vector.load %arg7[%c0_30, %c0_31] : memref<1x1xf32, #tpu.memory_space<vmem>>, vector<1x1xf32>
      %44 = vector.broadcast %43 : vector<1x1xf32> to vector<2x1xf32>
      %45 = arith.addf %42, %44 : vector<2x1xf32>
      %46 = arith.negf %45 : vector<2x1xf32>
      %47 = math.exp %46 : vector<2x1xf32>
      %cst_32 = arith.constant 1.000000e+00 : f32
      %48 = vector.broadcast %cst_32 : f32 to vector<2x1xf32>
      %49 = arith.addf %48, %47 : vector<2x1xf32>
      %50 = arith.divf %48, %49 : vector<2x1xf32>
      %c0_33 = arith.constant 0 : index
      %c0_34 = arith.constant 0 : index
      %51 = vector.load %arg8[%c0_33, %c0_34] : memref<2x1xf32, #tpu.memory_space<vmem>>, vector<2x1xf32>
      tpu.vector_store %arg8[%c0_33, %c0_34], %50 {strides = array<i32>} : memref<2x1xf32, #tpu.memory_space<vmem>>, vector<2x1xf32>,
    } else {
    }
    return
  }
  func.func @transform_0(%arg0: i32, %arg1: i32) -> (i32, i32) {
    %c0_i32 = arith.constant 0 : i32
    return %arg0, %arg1 : i32, i32
  }
  func.func @transform_1(%arg0: i32, %arg1: i32) -> (i32, i32, i32) {
    %c0_i32 = arith.constant 0 : i32
    %c0_i32_0 = arith.constant 0 : i32
    return %arg0, %arg1, %c0_i32 : i32, i32, i32
  }
  func.func @transform_2(%arg0: i32, %arg1: i32) -> (i32, i32) {
    %c0_i32 = arith.constant 0 : i32
    %c0_i32_0 = arith.constant 0 : i32
    %c0_i32_1 = arith.constant 0 : i32
    return %c0_i32, %c0_i32_0 : i32, i32
  }
  func.func @transform_3(%arg0: i32, %arg1: i32) -> (i32, i32) {
    %c0_i32 = arith.constant 0 : i32
    %c0_i32_0 = arith.constant 0 : i32
    %c0_i32_1 = arith.constant 0 : i32
    return %c0_i32, %c0_i32_0 : i32, i32
  }
  func.func @transform_4(%arg0: i32, %arg1: i32) -> (i32, i32) {
    %c0_i32 = arith.constant 0 : i32
    %c0_i32_0 = arith.constant 0 : i32
    %c0_i32_1 = arith.constant 0 : i32
    return %c0_i32, %c0_i32_0 : i32, i32
  }
  func.func @transform_5(%arg0: i32, %arg1: i32) -> (i32, i32) {
    %c0_i32 = arith.constant 0 : i32
    %c0_i32_0 = arith.constant 0 : i32
    %c0_i32_1 = arith.constant 0 : i32
    return %c0_i32, %c0_i32_0 : i32, i32
  }
  func.func @transform_6(%arg0: i32, %arg1: i32) -> (i32, i32) {
    %c0_i32 = arith.constant 0 : i32
    %c0_i32_0 = arith.constant 0 : i32
    return %arg0, %c0_i32 : i32, i32
  }
}

</mosaic_0001>

<bundles_post_ra>
// kernel: tpu_custom_call.1
= control target key start
LH: loop header
LB: loop body
LE: loop exit
PB: predicated region body
PF: predicated region fallthrough
CT: control target
= control target key end

     0   :  { %v43_v0 = vlaneseq  ;;  %v411_v2 = vmov 1966171168   ;;  %vm218_vm0 = vcmask 58368   ;;  %v412_v4 = vmov 0.0   ;;  %s492_s0 = inlined_call_operand.vmem [shape: s32[2,8], index: 0, kind: input, shape index: {}]   ;;  %s493_s1 = inlined_call_operand.vmem [shape: f32[2,8,32], index: 1, kind: input, shape index: {}]   ;;  %s494_s2 = inlined_call_operand.vmem [shape: f32[32,16], index: 2, kind: input, shape index: {}]   ;;  %s495_s5 = inlined_call_operand.<no memory space> [shape: f32[1,1], index: 5, kind: input, shape index: {}]   ;;  %s496_s3 = inlined_call_operand.vmem [shape: f32[1,16], index: 3, kind: input, shape index: {}]   ;;  %s497_s4 = inlined_call_operand.vmem [shape: f32[1,16], index: 4, kind: input, shape index: {}]   ;;  %s498_s6 = inlined_call_operand.vmem [shape: f32[2,1], index: 6, kind: output, shape index: {}]  }
   0x1   :  { %v33_v1 = vld [vmem:[%s492_s0] sm:$0x3]  ;;  %v41_v3 = vunpack.c.l.s4 %v411_v2  ;;  %372 = vmatprep.subr.mxu1 %v412_v4  ;;  %vm413_vm2 = vmmov 0   ;;  %vm31_vm3 = vcmask 1024   ;;  %vm62_vm4 = vcmask 64512   ;;  %v35_v14 = vld [vmem:[%s493_s1 + $0x8] sm:$0xff] }
   0x2   :  { %v34_v5 = vld [vmem:[%s493_s1] sm:$0xff]  ;;  %vm36_vm1 = vcmp.ne.s32.totalorder %v33_v1, 1  ;;  %v44_v6 = vshrl.u32 %v43_v0, 7  ;;  %374 = vmatprep.mubr.msk.f32.mxu1 %vm413_vm2, %v412_v4  ;;  %32 = vst.msk [vmem:[#allocation3] sm:$0x3] %vm31_vm3, %v412_v4  ;;  %390 = vmatprep.mubr.msk.f32.mxu0 %vm413_vm2, %v412_v4  ;;  %v414_v16 = vmov 0   ;;  %v11_v41 = vstv %s495_s5 }
   0x3   :  { %373 = vmatpush3.msra.mxu1 %v34_v5  ;;  %v355_v7 = vsel %vm36_vm1, 1.0, %v412_v4  ;;  %v42_v8 = vunpack.c.0.s8 %v41_v3  ;;  %404 = vset.pattern.permute.xlu0 %v414_v16  ;;  %vm29_vm5 = vcmask 254976   ;;  %v415_v22 = vmov 0.0|0.0   ;;  %v238_v23 = vld [vmem:[%s494_s2] sm:$0xff]  ;;  %v239_v24 = vld [vmem:[%s494_s2 + $0x8] sm:$0xff]  ;;  %v240_v25 = vld [vmem:[%s494_s2 + $0x10] sm:$0xff] }
   0x4   :  { %377 = vmatprep.subr.mxu1 %v412_v4  ;;  %v219_v9 = vsel %vm218_vm0, %v355_v7, 0.0  ;;  %30 = vst.msk [vmem:[#allocation2] sm:$0x3] %vm29_vm5, %v412_v4  ;;  %393 = vmatprep.subr.bf16.mxu0 %v415_v22  ;;  %v394_v26 = vpack.c.bf16 %v239_v24, %v238_v23  ;;  %v241_v27 = vld [vmem:[%s494_s2 + $0x18] sm:$0xff]  ;;  %vm211_vm6 = vcmask 1041409   ;;  %vm249_vm7 = vcmask 261120  }
   0x5   :  { %v45_v10 = vsub.s32 %v42_v8, %v44_v6  ;;  %220 = vadd.xlane.f32.xlu0 %v219_v9  ;;  %v397_v28 = vpack.c.bf16 %v241_v27, %v240_v25  ;;  %12 = vst [vmem:[#allocation4] sm:$0x1] %v11_v41  ;;  %v358_v42 = vld [vmem:[%s496_s3] ss:$0 sm:$0xff]  ;;  %vm332_vm8 = vcmask 123904  }
   0x6   :  { %395 = vmatpush3.bf16.msra.mxu0 %v394_v26  ;;  %v360_v46 = vld [vmem:[%s497_s4] ss:$0 sm:$0xff] }
   0x7   :  { %v46_v11 = vrot.slane %v355_v7, %v45_v10  ;;  %396 = vmatprep.subr.bf16.mxu0 %v415_v22 }
   0x9   :  { %v47_v12 = vcombine.high %v46_v11, %v46_v11  ;;  %v54_v13 = vrot.slane %v46_v11, %v45_v10  ;;  %v217_v17 = vld [vmem:[#allocation3] sm:$0x3] }
   0xa   :  { %398 = vmatpush3.bf16.msra.mxu0 %v397_v28 }
   0xb   :  { %v61_v15 = vrot.slane %v47_v12, %v45_v10  ;;  %375 = vmatmul.mubr.msk.f32.vlgmr.msra.gmra.mrb[0].mxu1 %vm62_vm4, %v54_v13  ;;  %v207_v32 = vld [vmem:[#allocation2] sm:$0x3] }
   0xc   :  { %378 = vmatpush3.msra.mxu1 %v35_v14  ;;  %379 = vmatprep.mubr.msk.f32.mxu1 %vm413_vm2, %v412_v4  ;;  %v361_v50 = vld [vmem:[#allocation4] ss:$0 sm:$0xff] }
   0xf   :  { %380 = vmatmul.mubr.msk.f32.vlgmr.msra.gmra.mrb[2].mxu1 %vm62_vm4, %v61_v15 }
  0x92   :  { %v221_v18 = vpop.xlane.xlu0 %220 }
  0x93   :  { %v222_v19 = vadd.f32 %v221_v18, %v217_v17 }
  0x95   :  { %224 = vst.msk [vmem:[#allocation3] sm:$0x3] %vm31_vm3, %v222_v19 }
  0x9c   :  { %v229_v20 = vld [vmem:[#allocation3] sm:$0x3] }
  0x9d   :  { %v230_v21 = vmax.f32 %v229_v20, 1e-09 }
  0x9f   :  { %233 = vperm.xlu0 %404, %v230_v21  }
  0xde   :  { %v131_v29 = vpop.f32.mrb[0].mxu1 }
  0xdf   :  { %v376_v30 = vpop.f32.mrb[1].mxu1 }
  0xe2   :  { %v203_v31 = vpop.f32.mrb[2].mxu1 }
  0xe3   :  { %v210_v33 = vrot.slane %v203_v31, 7  ;;  %v381_v34 = vpop.f32.mrb[3].mxu1 }
  0xe5   :  { %v212_v35 = vsel %vm211_vm6, %v210_v33, %v131_v29 }
  0xe6   :  { %v214_v36 = vadd.f32 %v212_v35, %v207_v32 }
  0xe8   :  { %216 = vst.msk [vmem:[#allocation2] sm:$0x3] %vm29_vm5, %v214_v36 }
  0xef   :  { %v228_v39 = vld [vmem:[#allocation2] sm:$0x3] }
 0x11e   :  { %v234_v37 = vpop.permute.xlu0 %233 }
 0x11f   :  { %405 = vrcp.f32 %v234_v37 }
 0x129   :  { %v406_v38 = vpop.eup %405 }
 0x12a   :  { %v237_v40 = vmul.f32 %v406_v38, %v228_v39 }
 0x12c   :  { %391 = vmatmul.mubr.msk.f32.vlgmr.msra.gmra.mrb[0].mxu0 %vm249_vm7, %v237_v40 }
 0x1ff   :  { %v319_v43 = vpop.f32.mrb[0].mxu0 }
 0x200   :  { %v320_v44 = vadd.f32 %v358_v42, %v319_v43  ;;  %v392_v45 = vpop.f32.mrb[1].mxu0 }
 0x202   :  { %v323_v47 = vmax.f32 %v320_v44, 0.0 }
 0x204   :  { %v331_v48 = vmul.f32 %v360_v46, %v323_v47 }
 0x206   :  { %v333_v49 = vsel %vm332_vm8, %v331_v48, 0.0 }
 0x207   :  { %334 = vadd.xlane.f32.xlu1 %v333_v49 }
 0x294   :  { %v335_v51 = vpop.xlane.xlu1 %334 }
 0x295   :  { %v343_v52 = vadd.f32 %v361_v50, %v335_v51 }
 0x297   :  { %v362_v53 = vmul.f32 -1.442695, %v343_v52 }
 0x299   :  { %407 = vpow2.f32 %v362_v53 }
 0x2a3   :  { %v408_v54 = vpop.eup %407 }
 0x2a4   :  { %v347_v55 = vadd.f32 1.0, %v408_v54 }
 0x2a6   :  { %409 = vrcp.f32 %v347_v55 }
 0x2b0   :  { %v410_v56 = vpop.eup %409 }
 0x2b1   :  { %350 = vst.msk [vmem:[%s498_s6] sm:$0x3] %vm31_vm3, %v410_v56 }

</bundles_post_ra>
